<compile_context>
chip_gen: v5e
topology: v5e:2x2
jax: 0.10.0
libtpu: 0.0.40
codegen_flags: <defaults>
</compile_context>

<pallas_src>
import functools

import jax
import jax.numpy as jnp
from jax import lax
from jax.experimental import pallas as pl
from jax.experimental.pallas import tpu as pltpu

_CHUNK_ROWS = 1024                      # rows per in-kernel reduce step (widened temp ~2 MiB)
_TARGET_BLOCK_BYTES = 8 * 1024 * 1024   # native-dtype bytes per pipelined block
_VMEM_LIMIT_BYTES = 32 * 1024 * 1024    # raises v5e's 16 MiB scoped default; within v7x budget

_FORCE_SINGLE_SHARD = False             # set if the 2-TensorCore variant fails to lower


def _cdiv(a: int, b: int) -> int:
    return -(-a // b)


def _tensorcores_per_chip() -> int:
    """Best-effort TensorCores per chip: 2 on v7x, 1 on v5e/v6e (and unknown)."""
    try:
        kind = jax.devices()[0].device_kind.lower()
    except Exception:
        return 1
    if "v7" in kind or "7x" in kind:
        return 2
    # TODO(synk): v4/v5p megacore (2 TCs behind one device) could also use 2
    # shards with "parallel" semantics; kept at 1 for the v5e/v6e/v7x targets.
    return 1


def _make_sum_kernel(*, rows, block_rows, chunk_rows, blocks_per_shard, acc_dtype):
    """Reduction kernel; all geometry is closed over as compile-time Python ints."""
    nchunks = block_rows // chunk_rows

    def kernel(x_ref, o_ref, acc_ref):
        c = pl.program_id(0)            # TensorCore shard
        j = pl.program_id(1)            # sequential block index within the shard

        @pl.when(j == 0)
        def _init():
            acc_ref[...] = jnp.zeros_like(acc_ref)

        # First logical row of this block. For the padded duplicate block that
        # only exists with 2 shards and an odd block count, rows_left <= 0 and
        # every chunk below is skipped (its re-DMA'd data contributes nothing).
        row0 = (c * blocks_per_shard + j) * block_rows
        rows_left = rows - row0

        def accumulate(start, valid):
            @pl.when(valid >= chunk_rows)           # hot path: unmasked VPU sum
            def _full():
                xc = x_ref[pl.ds(start, chunk_rows), :].astype(acc_dtype)
                acc_ref[...] += jnp.sum(xc, axis=0, keepdims=True)

            # Ragged tail chunk: executes at most once per whole reduction.
            @pl.when(jnp.logical_and(valid > 0, valid < chunk_rows))
            def _partial():
                xc = x_ref[pl.ds(start, chunk_rows), :].astype(acc_dtype)
                rid = lax.broadcasted_iota(jnp.int32, xc.shape, 0)
                acc_ref[...] += jnp.sum(
                    jnp.where(rid < valid, xc, jnp.zeros_like(xc)),
                    axis=0, keepdims=True)

        if nchunks == 1:
            accumulate(0, rows_left)
        else:
            @pl.loop(0, nchunks)
            def _chunks(ci):
                accumulate(pl.multiple_of(ci * chunk_rows, chunk_rows),
                           rows_left - ci * chunk_rows)

        @pl.when(j == blocks_per_shard - 1)
        def _finalize():
            # Single cross-lane reduce per shard; lane-dense (8, 128) store.
            o_ref[...] = jnp.broadcast_to(jnp.sum(acc_ref[...]), o_ref.shape)

    return kernel


@functools.partial(jax.jit, static_argnums=(1,))
def _total_sum_impl(spikes, shards: int):
    x = spikes
    if x.dtype == jnp.bool_:
        # TODO(synk): keep spikes as uint8 upstream (or a true bitcast view) to
        # drop this extra full HBM read+write before the reduction.
        x = x.astype(jnp.uint8)

    acc_dtype = jnp.int32 if jnp.issubdtype(x.dtype, jnp.integer) else jnp.float32
    x = x.reshape(-1)                   # row-major flatten: free
    n = x.shape[0]
    if n == 0:
        return jnp.zeros((), acc_dtype)
    if n < 128:
        return jnp.sum(x.astype(acc_dtype))          # below one lane row: no kernel

    # Lane-dense width that divides n -> zero-copy 2-D view (no prefix copy).
    width = next((w for w in (512, 256, 128) if n % w == 0), None)
    if width is None:
        width = 512 if n >= 512 else 128              # ragged n (uncommon): prefix copy
    rem = n % width
    bulk = n - rem
    rows = bulk // width
    x2d = (x if rem == 0 else x[:bulk]).reshape(rows, width)

    itemsize = x.dtype.itemsize
    if rows <= _CHUNK_ROWS:
        block_rows = rows               # full row extent: always a legal block
        chunk_rows = rows
    else:
        cap = max(_CHUNK_ROWS, _TARGET_BLOCK_BYTES // (width * itemsize))
        block_rows = min(cap, rows)
        block_rows = max(_CHUNK_ROWS, (block_rows // _CHUNK_ROWS) * _CHUNK_ROWS)
        chunk_rows = _CHUNK_ROWS

    blocks_total = _cdiv(rows, block_rows)
    shards = max(1, min(int(shards), blocks_total))
    blocks_per_shard = _cdiv(blocks_total, shards)
    needs_clamp = shards * blocks_per_shard > blocks_total

    kernel = _make_sum_kernel(rows=rows, block_rows=block_rows, chunk_rows=chunk_rows,
                              blocks_per_shard=blocks_per_shard, acc_dtype=acc_dtype)

    def x_index(c, j):
        b = c * blocks_per_shard + j
        if needs_clamp:                 # only possible with 2 shards and odd block count
            b = jnp.minimum(b, blocks_total - 1)
        return (b, 0)

    def o_index(c, j):
        return (c, 0)

    if shards > 1:
        core_parallel = getattr(pltpu, "CORE_PARALLEL", None)
        arbitrary = getattr(pltpu, "ARBITRARY", "arbitrary")
        dim_sem = ((core_parallel, arbitrary) if core_parallel is not None
                   else ("parallel", "arbitrary"))
    else:
        dim_sem = ("arbitrary", "arbitrary")

    out = pl.pallas_call(
        kernel,
        out_shape=jax.ShapeDtypeStruct((shards * 8, 128), acc_dtype),
        grid=(shards, blocks_per_shard),
        in_specs=[pl.BlockSpec((block_rows, width), x_index)],
        out_specs=pl.BlockSpec((8, 128), o_index),
        scratch_shapes=[pltpu.VMEM((1, width), acc_dtype)],
        compiler_params=pltpu.CompilerParams(
            dimension_semantics=dim_sem,
            vmem_limit_bytes=_VMEM_LIMIT_BYTES,
        ),
    )(x2d)

    total = jnp.sum(out[::8, 0])        # add the per-TensorCore partials
    if rem:
        total = total + jnp.sum(x[bulk:].astype(acc_dtype))   # < width elements
    return total


def pallas_total_sum(spikes: jax.Array) -> jax.Array:
    """Sum of all elements of `spikes` (f32 for float inputs, i32 for int/bool)."""
    global _FORCE_SINGLE_SHARD
    shards = 1 if _FORCE_SINGLE_SHARD else _tensorcores_per_chip()
    try:
        return _total_sum_impl(spikes, shards)
    except Exception:
        if shards == 1:
            raise
        _FORCE_SINGLE_SHARD = True      # CORE_PARALLEL path unavailable on this build
        return _total_sum_impl(spikes, 1)


class AbstractNetwork:
    """JAX/Pallas port of Lave's AbstractNetwork (forward-pass semantics)."""

    def __init__(self, n_inpt, n_classes, inpt_shape, device=None):
        self.n_inpt = n_inpt
        self.n_classes = n_classes
        self.inpt_shape = inpt_shape
        self.computed_images_train = 0
        self.computed_images_test = 0
        self.layers = {}
        # Recorders accumulate as device scalars (no per-forward host sync);
        # reading them with int(...) transfers to host once, on demand.
        self.recorders_train = {"inpt": 0}
        self.recorders_test = {"inpt": 0}
        self._train_mode = True
        self.device = None

    def _update_recorders(self, spikes, layer):
        numspikes = pallas_total_sum(spikes)        # stays on device
        rec = self.recorders_train if self._train_mode else self.recorders_test
        rec[layer] = rec.get(layer, 0) + numspikes

    def forward(self, spikes):
        # torch.sum(spikes).to(dtype=int): truncate the total to an integer.
        total = pallas_total_sum(spikes)
        total_int = total.astype(jnp.int32)          # device-side truncation
        if self._train_mode:
            self.recorders_train["inpt"] = self.recorders_train["inpt"] + total_int
            self.computed_images_train += int(spikes.shape[0])
        else:
            self.recorders_test["inpt"] = self.recorders_test["inpt"] + total_int
            self.computed_images_test += int(spikes.shape[0])
        return total  # torch version returns None; returned here for block_until_ready

    __call__ = forward

    def register_layer(self, name, layer):
        self.layers[name] = layer

    # TODO(synk): save()/export_hdf5 (h5py file I/O) has no Pallas equivalent; omitted.


if __name__ == "__main__":
    key = jax.random.PRNGKey(0)
    k1, k2, k3 = jax.random.split(key, 3)

    # Small NCHW spike tensor for the forward pass (2048 elements, lane-aligned).
    B, C, H, W = 2, 4, 16, 16
    spikes = jax.random.bernoulli(k1, p=0.3, shape=(B, C, H, W)).astype(jnp.float32)

    net = AbstractNetwork(n_inpt=C * H * W, n_classes=10, inpt_shape=(C, H, W))
    out = net(spikes)
    jax.block_until_ready(out)

    assert int(net.recorders_train["inpt"]) == int(jnp.sum(spikes))
    assert net.computed_images_train == B

    # Ragged element count (1155): exercises the masked-tail / remainder path.
    ragged = jax.random.bernoulli(k2, p=0.5, shape=(3, 5, 7, 11)).astype(jnp.float32)
    net._update_recorders(ragged, "layer1")
    jax.block_until_ready(net.recorders_train["layer1"])
    assert int(net.recorders_train["layer1"]) == int(jnp.sum(ragged))

    # Bool spikes: exact int32 accumulation path.
    bspk = jax.random.bernoulli(k3, p=0.3, shape=(16, 4, 16, 16))
    net._update_recorders(bspk, "layer2")
    jax.block_until_ready(net.recorders_train["layer2"])
    assert int(net.recorders_train["layer2"]) == int(jnp.sum(bspk.astype(jnp.int32)))

    print("KERNEL_OK")
</pallas_src>

<mosaic_0001>
module attributes {stable_mosaic.version = 11 : i64} {
  func.func @kernel(%arg0: i32, %arg1: i32, %arg2: memref<4x512xf32, #tpu.memory_space<vmem>>, %arg3: memref<8x128xf32, #tpu.memory_space<vmem>>, %arg4: memref<1x512xf32, #tpu.memory_space<vmem>>) attributes {dimension_semantics = [#tpu.dimension_semantics<arbitrary>, #tpu.dimension_semantics<arbitrary>], iteration_bounds = array<i64: 1, 1>, scalar_prefetch = 0 : i64, scratch_operands = 1 : i64, tpu.core_type = #tpu.core_type<tc>, window_params = [{transform_indices = @transform_0, window_bounds = array<i64: 4, 512>}, {transform_indices = @transform_1, window_bounds = array<i64: 8, 128>}]} {
    %c0_i32 = arith.constant 0 : i32
    %0 = arith.cmpi eq, %arg1, %c0_i32 : i32
    %1 = arith.extui %0 : i1 to i32
    %c0_i32_0 = arith.constant 0 : i32
    %2 = arith.cmpi ne, %1, %c0_i32_0 : i32
    scf.if %2 {
      %cst = arith.constant 0.000000e+00 : f32
      %18 = vector.broadcast %cst : f32 to vector<1x512xf32>
      %c0 = arith.constant 0 : index
      %c0_9 = arith.constant 0 : index
      %19 = vector.load %arg4[%c0, %c0_9] : memref<1x512xf32, #tpu.memory_space<vmem>>, vector<1x512xf32>
      tpu.vector_store %arg4[%c0, %c0_9], %18 {strides = array<i32>} : memref<1x512xf32, #tpu.memory_space<vmem>>, vector<1x512xf32>,
    } else {
    }
    %c1_i32 = arith.constant 1 : i32
    %3 = arith.muli %arg0, %c1_i32 : i32
    %4 = arith.addi %3, %arg1 : i32
    %c4_i32 = arith.constant 4 : i32
    %5 = arith.muli %4, %c4_i32 : i32
    %c4_i32_1 = arith.constant 4 : i32
    %6 = arith.subi %c4_i32_1, %5 : i32
    %c4_i32_2 = arith.constant 4 : i32
    %7 = arith.cmpi sge, %6, %c4_i32_2 : i32
    %8 = arith.extui %7 : i1 to i32
    %c0_i32_3 = arith.constant 0 : i32
    %9 = arith.cmpi ne, %8, %c0_i32_3 : i32
    scf.if %9 {
      %c0 = arith.constant 0 : index
      %c0_9 = arith.constant 0 : index
      %18 = vector.load %arg2[%c0, %c0_9] : memref<4x512xf32, #tpu.memory_space<vmem>>, vector<4x512xf32>
      %c0_10 = arith.constant 0 : index
      %c0_11 = arith.constant 0 : index
      %19 = vector.load %arg4[%c0_10, %c0_11] : memref<1x512xf32, #tpu.memory_space<vmem>>, vector<1x512xf32>
      %cst = arith.constant dense<0.000000e+00> : vector<512xf32>
      %20 = vector.multi_reduction <add>, %18, %cst [0] : vector<4x512xf32> to vector<512xf32>
      %21 = vector.shape_cast %20 : vector<512xf32> to vector<1x512xf32>
      %22 = arith.addf %19, %21 : vector<1x512xf32>
      %c0_12 = arith.constant 0 : index
      %c0_13 = arith.constant 0 : index
      %23 = vector.load %arg4[%c0_12, %c0_13] : memref<1x512xf32, #tpu.memory_space<vmem>>, vector<1x512xf32>
      tpu.vector_store %arg4[%c0_12, %c0_13], %22 {strides = array<i32>} : memref<1x512xf32, #tpu.memory_space<vmem>>, vector<1x512xf32>,
    } else {
    }
    %c0_i32_4 = arith.constant 0 : i32
    %10 = arith.cmpi sgt, %6, %c0_i32_4 : i32
    %c4_i32_5 = arith.constant 4 : i32
    %11 = arith.cmpi slt, %6, %c4_i32_5 : i32
    %12 = arith.andi %10, %11 : i1
    %13 = arith.extui %12 : i1 to i32
    %c0_i32_6 = arith.constant 0 : i32
    %14 = arith.cmpi ne, %13, %c0_i32_6 : i32
    scf.if %14 {
      %c0 = arith.constant 0 : index
      %c0_9 = arith.constant 0 : index
      %18 = vector.load %arg2[%c0, %c0_9] : memref<4x512xf32, #tpu.memory_space<vmem>>, vector<4x512xf32>
      %19 = tpu.iota {dimensions = array<i32: 0>} : vector<4x512xi32>
      %c0_10 = arith.constant 0 : index
      %c0_11 = arith.constant 0 : index
      %20 = vector.load %arg4[%c0_10, %c0_11] : memref<1x512xf32, #tpu.memory_space<vmem>>, vector<1x512xf32>
      %21 = vector.broadcast %6 : i32 to vector<4x512xi32>
      %22 = arith.cmpi slt, %19, %21 : vector<4x512xi32>
      %cst = arith.constant 0.000000e+00 : f32
      %23 = vector.broadcast %cst : f32 to vector<4x512xf32>
      %24 = arith.select %22, %18, %23 : vector<4x512xi1>, vector<4x512xf32>
      %cst_12 = arith.constant dense<0.000000e+00> : vector<512xf32>
      %25 = vector.multi_reduction <add>, %24, %cst_12 [0] : vector<4x512xf32> to vector<512xf32>
      %26 = vector.shape_cast %25 : vector<512xf32> to vector<1x512xf32>
      %27 = arith.addf %20, %26 : vector<1x512xf32>
      %c0_13 = arith.constant 0 : index
      %c0_14 = arith.constant 0 : index
      %28 = vector.load %arg4[%c0_13, %c0_14] : memref<1x512xf32, #tpu.memory_space<vmem>>, vector<1x512xf32>
      tpu.vector_store %arg4[%c0_13, %c0_14], %27 {strides = array<i32>} : memref<1x512xf32, #tpu.memory_space<vmem>>, vector<1x512xf32>,
    } else {
    }
    %c0_i32_7 = arith.constant 0 : i32
    %15 = arith.cmpi eq, %arg1, %c0_i32_7 : i32
    %16 = arith.extui %15 : i1 to i32
    %c0_i32_8 = arith.constant 0 : i32
    %17 = arith.cmpi ne, %16, %c0_i32_8 : i32
    scf.if %17 {
      %c0 = arith.constant 0 : index
      %c0_9 = arith.constant 0 : index
      %18 = vector.load %arg4[%c0, %c0_9] : memref<1x512xf32, #tpu.memory_space<vmem>>, vector<1x512xf32>
      %19 = vector.shape_cast %18 : vector<1x512xf32> to vector<1x1x512xf32>
      %cst = arith.constant dense<0.000000e+00> : vector<1xf32>
      %20 = vector.multi_reduction <add>, %19, %cst [1, 2] : vector<1x1x512xf32> to vector<1xf32>
      %21 = vector.shape_cast %20 : vector<1xf32> to vector<1x1x1xf32>
      %22 = vector.extract %21[0, 0, 0] : f32 from vector<1x1x1xf32>
      %23 = vector.broadcast %22 : f32 to vector<8x128xf32>
      %c0_10 = arith.constant 0 : index
      %c0_11 = arith.constant 0 : index
      %24 = vector.load %arg3[%c0_10, %c0_11] : memref<8x128xf32, #tpu.memory_space<vmem>>, vector<8x128xf32>
      tpu.vector_store %arg3[%c0_10, %c0_11], %23 {strides = array<i32>} : memref<8x128xf32, #tpu.memory_space<vmem>>, vector<8x128xf32>,
    } else {
    }
    return
  }
  func.func @transform_0(%arg0: i32, %arg1: i32) -> (i32, i32) {
    %c1_i32 = arith.constant 1 : i32
    %0 = arith.muli %arg0, %c1_i32 : i32
    %1 = arith.addi %0, %arg1 : i32
    %c0_i32 = arith.constant 0 : i32
    %c0_i32_0 = arith.constant 0 : i32
    return %1, %c0_i32 : i32, i32
  }
  func.func @transform_1(%arg0: i32, %arg1: i32) -> (i32, i32) {
    %c0_i32 = arith.constant 0 : i32
    %c0_i32_0 = arith.constant 0 : i32
    return %arg0, %c0_i32 : i32, i32
  }
}

</mosaic_0001>

<bundles_post_ra>
// kernel: _total_sum_impl.1
= control target key start
LH: loop header
LB: loop body
LE: loop exit
PB: predicated region body
PF: predicated region fallthrough
CT: control target
= control target key end

     0   :  { %v32_v0 = vlaneseq  ;;  %v233_v4 = vmov 0.0   ;;  %vm60_vm1 = vcmask 1043456   ;;  %vm96_vm2 = vcmask 1040384   ;;  %s266_s0 = inlined_call_operand.vmem [shape: f32[4,512], index: 0, kind: input, shape index: {}]   ;;  %s267_s1 = inlined_call_operand.vmem [shape: f32[8,128], index: 1, kind: output, shape index: {}]  }
   0x1   :  { %v44_v1 = vld [vmem:[%s266_s0] sm:$0xff]  ;;  %v45_v2 = vld [vmem:[%s266_s0 + $0x8] sm:$0xff]  ;;  %vm98_vm3 = vcmask 1042434   ;;  %vm100_vm4 = vcmask 1041408  }
   0x2   :  { %vm250_vm0 = vcmp.lt.s32.totalorder %v32_v0, 512  ;;  %49 = vst [vmem:[#allocation1] ss:$2 sm:$0xff] %v44_v1 }
   0x3   :  { %36 = vst.msk [vmem:[#allocation2] sm:$0xf] %vm250_vm0, %v233_v4 }
   0x4   :  { %51 = vst [vmem:[#allocation1 + $0x10] ss:$2 sm:$0xff] %v45_v2 }
   0x9   :  { %v52_v5 = vld.sshfl [vmem:[#allocation1] sm:$0xff pattern:$0x75316420]  ;;  %v53_v6 = vld.sshfl [vmem:[#allocation1 + $0x8] sm:$0xff pattern:$0x75316420] }
   0xa   :  { %v61_v7 = vsel %vm60_vm1, %v52_v5, 0.0  ;;  %v68_v8 = vsel %vm60_vm1, %v53_v6, 0.0  ;;  %v46_v40 = vld [vmem:[#allocation2] sm:$0xf] }
   0xb   :  { %v54_v9 = vld.sshfl [vmem:[#allocation1 + $0x10] sm:$0xff pattern:$0x75316420]  ;;  %v55_v10 = vld.sshfl [vmem:[#allocation1 + $0x18] sm:$0xff pattern:$0x75316420] }
   0xc   :  { %v62_v11 = vrot.slane %v61_v7, 4  ;;  %v69_v12 = vrot.slane %v68_v8, 4  ;;  %v75_v13 = vsel %vm60_vm1, %v54_v9, 0.0  ;;  %v82_v14 = vsel %vm60_vm1, %v55_v10, 0.0 }
   0xd   :  { %v76_v15 = vrot.slane %v75_v13, 4  ;;  %v83_v16 = vrot.slane %v82_v14, 4 }
   0xe   :  { %v63_v17 = vadd.f32 %v62_v11, %v61_v7  ;;  %v70_v18 = vadd.f32 %v69_v12, %v68_v8 }
   0xf   :  { %v77_v19 = vadd.f32 %v76_v15, %v75_v13  ;;  %v84_v20 = vadd.f32 %v83_v16, %v82_v14 }
  0x10   :  { %v64_v21 = vrot.slane %v63_v17, 2  ;;  %v71_v22 = vrot.slane %v70_v18, 2 }
  0x11   :  { %v78_v23 = vrot.slane %v77_v19, 2  ;;  %v85_v24 = vrot.slane %v84_v20, 2 }
  0x12   :  { %v65_v25 = vadd.f32 %v64_v21, %v63_v17  ;;  %v72_v26 = vadd.f32 %v71_v22, %v70_v18 }
  0x13   :  { %v79_v27 = vadd.f32 %v78_v23, %v77_v19  ;;  %v86_v28 = vadd.f32 %v85_v24, %v84_v20 }
  0x14   :  { %v66_v29 = vrot.slane %v65_v25, 1  ;;  %v73_v30 = vrot.slane %v72_v26, 1 }
  0x15   :  { %v80_v31 = vrot.slane %v79_v27, 1  ;;  %v87_v32 = vrot.slane %v86_v28, 1 }
  0x16   :  { %v67_v33 = vadd.f32 %v66_v29, %v65_v25  ;;  %v74_v34 = vadd.f32 %v73_v30, %v72_v26 }
  0x17   :  { %v81_v35 = vadd.f32 %v80_v31, %v79_v27  ;;  %v88_v36 = vadd.f32 %v87_v32, %v86_v28 }
  0x18   :  { %v93_v37 = vrot.slane %v74_v34, 7 }
  0x19   :  { %v94_v38 = vrot.slane %v81_v35, 6  ;;  %v95_v39 = vrot.slane %v88_v36, 5 }
  0x1a   :  { %v97_v41 = vsel %vm96_vm2, %v67_v33, %v93_v37 }
  0x1b   :  { %v99_v42 = vsel %vm98_vm3, %v94_v38, %v95_v39 }
  0x1c   :  { %v101_v43 = vsel %vm100_vm4, %v97_v41, %v99_v42 }
  0x1d   :  { %v103_v44 = vadd.f32 %v101_v43, %v46_v40 }
  0x1f   :  { %108 = vst.msk [vmem:[#allocation2] sm:$0xf] %vm250_vm0, %v103_v44 }
  0x26   :  { %v191_v45 = vld [vmem:[#allocation2] sm:$0xf] }
  0x27   :  { %v193_v46 = vperm.slane %v191_v45, 0  ;;  %v194_v47 = vperm.slane %v191_v45, 1  ;;  %v195_v48 = vperm.slane %v191_v45, 2  ;;  %v196_v49 = vperm.slane %v191_v45, 3 }
  0x29   :  { %v202_v50 = vsel %vm96_vm2, %v193_v46, 0.0  ;;  %v203_v51 = vsel %vm96_vm2, %v194_v47, 0.0  ;;  %v205_v52 = vsel %vm96_vm2, %v195_v48, 0.0  ;;  %v207_v54 = vsel %vm96_vm2, %v196_v49, 0.0 }
  0x2a   :  { %v204_v53 = vadd.f32 %v203_v51, %v202_v50 }
  0x2c   :  { %v206_v55 = vadd.f32 %v205_v52, %v204_v53 }
  0x2e   :  { %v208_v56 = vadd.f32 %v207_v54, %v206_v55 }
  0x30   :  { %209 = vadd.xlane.f32.xlu0 %v208_v56 }
  0xa3   :  { %v210_v57 = vpop.xlane.xlu0 %209 }
  0xa4   :  { %v211_v58 = vrot.slane %v210_v57, 4 }
  0xa6   :  { %v212_v59 = vadd.f32 %v211_v58, %v210_v57 }
  0xa8   :  { %v213_v60 = vrot.slane %v212_v59, 2 }
  0xaa   :  { %v214_v61 = vadd.f32 %v213_v60, %v212_v59 }
  0xac   :  { %v215_v62 = vrot.slane %v214_v61, 1 }
  0xae   :  { %v216_v63 = vadd.f32 %v215_v62, %v214_v61 }
  0xb0   :  { %230 = vpush %v216_v63 }
  0xe1   :  { %s231_s0 = spop %230 }
  0xe2   :  { %v218_v0 = vstv %s231_s0 }
  0xe3   :  { %219 = vst [vmem:[%s267_s1] sm:$0xff] %v218_v0 }

</bundles_post_ra>
